<compile_context>
chip_gen: v6e
topology: v6e:2x2x1
jax: 0.10.0
libtpu: 0.0.40
codegen_flags: <defaults>
</compile_context>

<pallas_src>
import functools

import jax
import jax.numpy as jnp
from jax.experimental import pallas as pl
from jax.experimental.pallas import tpu as pltpu


TEMPERATURE = 0.1
INIT = 0.99
GAMMA = 0.5

_MIN_GRID_STEPS = 4            # keep >= 4 grid steps so both v7x TCs get work
_TARGET_BLOCK_BYTES = 2 << 20  # ~2 MiB streamed block: >= 85% of HBM roofline
_VMEM_HEADROOM = 6 << 20       # Mosaic internal scratch + elementwise temporaries


def _vmem_limit_bytes():
    """Generation-aware VMEM limit: 48 MiB on v7x (64 MiB/TC), 64 MiB on v5e/v6e."""
    cap = 64 << 20  # assume the smallest generation if the query is unavailable
    try:
        cap = int(getattr(pltpu.get_tpu_info(), "vmem_capacity_bytes", cap))
    except Exception:
        pass
    return min((cap * 3) // 4, 64 << 20)


def _sublane_multiple(*dtypes):
    """Row-alignment for the narrowest streamed dtype (8 f32 / 16 bf16 / 32 int8)."""
    min_bytes = min(jnp.dtype(d).itemsize for d in dtypes)
    return max(8, 32 // max(min_bytes, 1))


def _choose_tile_n(n, f, x_bytes, out_bytes, m_bytes, sublane, vmem_limit):
    """Largest batch tile (multiple of `sublane`) fitting the byte targets."""
    if n <= sublane:
        return n
    # Pipelined per-row footprint: double-buffered x / x_out / m blocks plus ~16 B/elem
    # of f32 elementwise temporaries (u, pre, exp, ...) inside the kernel body.
    per_row = f * (2 * (x_bytes + out_bytes + m_bytes) + 16)
    rows_by_budget = max(sublane, (vmem_limit - _VMEM_HEADROOM) // max(per_row, 1))
    # Byte-based block target (replaces the old fixed 1024-row cap).
    widest = max(x_bytes, out_bytes, m_bytes)
    rows_by_block = max(sublane, _TARGET_BLOCK_BYTES // max(f * widest, 1))
    # Keep at least _MIN_GRID_STEPS steps so "parallel" can shard across TensorCores.
    rows_by_grid = max(sublane, -(-n // _MIN_GRID_STEPS))
    tile = min(n, rows_by_budget, rows_by_block, rows_by_grid)
    return max(sublane, (tile // sublane) * sublane)


def _gates_kernel_tpu(seed_ref, x_ref, logits_ref, x_out_ref, m_ref, *, inv_temperature):
    # Independent PRNG stream per batch tile; mix seed and tile id so consecutive
    # base seeds / different tile sizes don't alias streams.
    pltpu.prng_seed(seed_ref[0] * jnp.int32(1000003) + pl.program_id(0))
    raw = pltpu.bitcast(pltpu.prng_random_bits(x_ref.shape), jnp.uint32)
    # Mantissa trick: float32 in [1, 2) from the top 23 random bits, minus 1 -> [0, 1).
    u = pltpu.bitcast((raw >> jnp.uint32(9)) | jnp.uint32(0x3F800000), jnp.float32)
    u = u - jnp.float32(1.0)
    eps = jnp.float32(jnp.finfo(jnp.float32).eps)
    u = jnp.clip(u, eps, jnp.float32(1.0) - eps)
    # BinConcrete: sigmoid((logits + log(u/(1-u))) / T).
    #   logsigmoid(z) - logsigmoid(-z) == z exactly; 1/T folded into a constant.
    #   approx reciprocals: single EUP push each instead of div / sigmoid Newton chains
    #   (precision loss irrelevant for a stochastic relaxation mask).
    ratio = u * pl.reciprocal(jnp.float32(1.0) - u, approx=True)
    pre = (logits_ref[...] + jnp.log(ratio)) * jnp.float32(inv_temperature)
    m = pl.reciprocal(jnp.float32(1.0) + jnp.exp(-pre), approx=True)
    m = jnp.minimum(m, jnp.float32(1.0))  # guard approx-rcp overshoot above 1
    m_ref[...] = m.astype(m_ref.dtype)
    x_out_ref[...] = (x_ref[...].astype(jnp.float32) * m).astype(x_out_ref.dtype)


def _gates_kernel_hostu(x_ref, u_ref, logits_ref, x_out_ref, m_ref, *, inv_temperature):
    # Fallback path (non-TPU backends): uniforms generated outside the kernel.
    eps = jnp.float32(jnp.finfo(jnp.float32).eps)
    u = jnp.clip(u_ref[...], eps, jnp.float32(1.0) - eps)
    pre = (logits_ref[...] + jnp.log(u / (jnp.float32(1.0) - u))) * jnp.float32(inv_temperature)
    m = jax.nn.sigmoid(pre)
    m_ref[...] = m.astype(m_ref.dtype)
    x_out_ref[...] = (x_ref[...].astype(jnp.float32) * m).astype(x_out_ref.dtype)


def binary_gates_forward(x, logits_param, seed,
                         temperature=TEMPERATURE, gamma=GAMMA,
                         tile_n=None, out_dtype=None, mask_dtype=jnp.float32):
    """Apply BinaryGates: returns (x * m, m) with m sampled per row.

    out_dtype / mask_dtype default to the PyTorch float32-promotion semantics;
    pass out_dtype=x.dtype and/or mask_dtype=jnp.bfloat16 to cut HBM bytes
    (diverges from exact torch promotion).
    """
    n, f = x.shape
    if out_dtype is None:
        out_dtype = jnp.promote_types(x.dtype, jnp.float32)  # torch promotion
    # logits/gamma precomputed once as a (1, F) row; 1/T folded into a constant.
    logits = (logits_param.astype(jnp.float32) * jnp.float32(1.0 / gamma)).reshape(1, f)
    inv_t = 1.0 / float(temperature)

    x_bytes = jnp.dtype(x.dtype).itemsize
    out_bytes = jnp.dtype(out_dtype).itemsize
    m_bytes = jnp.dtype(mask_dtype).itemsize
    sublane = _sublane_multiple(x.dtype, out_dtype, mask_dtype)
    vmem_limit = _vmem_limit_bytes()
    if tile_n is None:
        tile_n = _choose_tile_n(n, f, x_bytes, out_bytes, m_bytes, sublane, vmem_limit)
    grid = (pl.cdiv(n, tile_n),)

    # Index maps accept trailing scalar-prefetch refs (TPU path) or nothing (fallback).
    row_spec = pl.BlockSpec((tile_n, f), lambda i, *_: (i, 0))
    logit_spec = pl.BlockSpec((1, f), lambda i, *_: (0, 0))
    out_shape = (jax.ShapeDtypeStruct((n, f), out_dtype),
                 jax.ShapeDtypeStruct((n, f), mask_dtype))
    out_specs = [row_spec, row_spec]

    if jax.default_backend() == "tpu":
        kernel = functools.partial(_gates_kernel_tpu, inv_temperature=inv_t)
        grid_spec = pltpu.PrefetchScalarGridSpec(
            num_scalar_prefetch=1,
            grid=grid,
            in_specs=[row_spec, logit_spec],
            out_specs=out_specs,
        )
        cost = pl.CostEstimate(
            flops=int(10 * n * f),
            transcendentals=int(3 * n * f),
            bytes_accessed=int(n * f * (x_bytes + out_bytes + m_bytes) + 4 * f),
        )
        return pl.pallas_call(
            kernel,
            out_shape=out_shape,
            grid_spec=grid_spec,
            compiler_params=pltpu.CompilerParams(
                dimension_semantics=("parallel",),
                vmem_limit_bytes=int(vmem_limit),
            ),
            cost_estimate=cost,
        )(jnp.array([seed], dtype=jnp.int32), x, logits)

    # Non-TPU backend (e.g. CPU interpret harness): Mosaic hardware PRNG is not
    # available, so draw the uniforms with jax.random and tile them like x.
    u = jax.random.uniform(jax.random.PRNGKey(int(seed)), (n, f), dtype=jnp.float32)
    kernel = functools.partial(_gates_kernel_hostu, inv_temperature=inv_t)
    grid_spec = pl.GridSpec(
        grid=grid,
        in_specs=[row_spec, row_spec, logit_spec],
        out_specs=out_specs,
    )
    return pl.pallas_call(kernel, out_shape=out_shape, grid_spec=grid_spec)(x, u, logits)


if __name__ == "__main__":
    # Deterministic small example.
    batch = 16
    input_size = 128

    key = jax.random.PRNGKey(0)
    x = jax.random.normal(key, (batch, input_size), dtype=jnp.float32)

    # Parameter init exactly as the module's __init__:
    #   init_logit = -log(1/init - 1) * gamma, broadcast to (input_size,)
    init_logit = -jnp.log(1.0 / jnp.float32(INIT) - 1.0) * jnp.float32(GAMMA)
    logits_param = jnp.full((input_size,), init_logit, dtype=jnp.float32)

    # Auto tile sizing: for n=16 this picks tile_n=8 -> grid=(2,), exercising the
    # batch tiling / per-tile PRNG-stream path.
    x_out, m = binary_gates_forward(x, logits_param, seed=0)
    jax.block_until_ready((x_out, m))

    # Sanity checks: shapes, mask range, gating identity, finiteness.
    assert x_out.shape == (batch, input_size) and m.shape == (batch, input_size)
    assert bool(jnp.all((m >= 0.0) & (m <= 1.0)))
    assert bool(jnp.allclose(x_out, x * m, rtol=1e-6, atol=1e-6))
    assert bool(jnp.all(jnp.isfinite(x_out))) and bool(jnp.all(jnp.isfinite(m)))

    print("KERNEL_OK")
</pallas_src>

<mosaic_0001>
module attributes {stable_mosaic.version = 11 : i64} {
  func.func @_gates_kernel_hostu(%arg0: i32, %arg1: memref<8x128xf32, #tpu.memory_space<vmem>>, %arg2: memref<8x128xf32, #tpu.memory_space<vmem>>, %arg3: memref<1x128xf32, #tpu.memory_space<vmem>>, %arg4: memref<8x128xf32, #tpu.memory_space<vmem>>, %arg5: memref<8x128xf32, #tpu.memory_space<vmem>>) attributes {dimension_semantics = [#tpu.dimension_semantics<arbitrary>], iteration_bounds = array<i64: 2>, scalar_prefetch = 0 : i64, scratch_operands = 0 : i64, tpu.core_type = #tpu.core_type<tc>, window_params = [{transform_indices = @transform_0, window_bounds = array<i64: 8, 128>}, {transform_indices = @transform_1, window_bounds = array<i64: 8, 128>}, {pipeline_mode = #tpu.pipeline_mode<synchronous>, transform_indices = @transform_2, window_bounds = array<i64: 1, 128>}, {transform_indices = @transform_3, window_bounds = array<i64: 8, 128>}, {transform_indices = @transform_4, window_bounds = array<i64: 8, 128>}]} {
    %c0 = arith.constant 0 : index
    %c0_0 = arith.constant 0 : index
    %0 = vector.load %arg2[%c0, %c0_0] : memref<8x128xf32, #tpu.memory_space<vmem>>, vector<8x128xf32>
    %cst = arith.constant 1.000000e+00 : f32
    %cst_1 = arith.constant 1.1920929E-7 : f32
    %1 = arith.subf %cst, %cst_1 : f32
    %cst_2 = arith.constant 1.1920929E-7 : f32
    %2 = vector.broadcast %cst_2 : f32 to vector<8x128xf32>
    %3 = arith.maximumf %2, %0 : vector<8x128xf32>
    %4 = vector.broadcast %1 : f32 to vector<8x128xf32>
    %5 = arith.minimumf %4, %3 : vector<8x128xf32>
    %c0_3 = arith.constant 0 : index
    %c0_4 = arith.constant 0 : index
    %6 = vector.load %arg3[%c0_3, %c0_4] : memref<1x128xf32, #tpu.memory_space<vmem>>, vector<1x128xf32>
    %cst_5 = arith.constant 1.000000e+00 : f32
    %7 = vector.broadcast %cst_5 : f32 to vector<8x128xf32>
    %8 = arith.subf %7, %5 : vector<8x128xf32>
    %9 = arith.divf %5, %8 : vector<8x128xf32>
    %10 = math.log %9 : vector<8x128xf32>
    %11 = vector.broadcast %6 : vector<1x128xf32> to vector<8x128xf32>
    %12 = arith.addf %11, %10 : vector<8x128xf32>
    %cst_6 = arith.constant 1.000000e+01 : f32
    %13 = vector.broadcast %cst_6 : f32 to vector<8x128xf32>
    %14 = arith.mulf %12, %13 : vector<8x128xf32>
    %15 = arith.negf %14 : vector<8x128xf32>
    %16 = math.exp %15 : vector<8x128xf32>
    %cst_7 = arith.constant 1.000000e+00 : f32
    %17 = vector.broadcast %cst_7 : f32 to vector<8x128xf32>
    %18 = arith.addf %17, %16 : vector<8x128xf32>
    %19 = arith.divf %17, %18 : vector<8x128xf32>
    %c0_8 = arith.constant 0 : index
    %c0_9 = arith.constant 0 : index
    %20 = vector.load %arg5[%c0_8, %c0_9] : memref<8x128xf32, #tpu.memory_space<vmem>>, vector<8x128xf32>
    tpu.vector_store %arg5[%c0_8, %c0_9], %19 {strides = array<i32>} : memref<8x128xf32, #tpu.memory_space<vmem>>, vector<8x128xf32>,
    %c0_10 = arith.constant 0 : index
    %c0_11 = arith.constant 0 : index
    %21 = vector.load %arg1[%c0_10, %c0_11] : memref<8x128xf32, #tpu.memory_space<vmem>>, vector<8x128xf32>
    %22 = arith.mulf %21, %19 : vector<8x128xf32>
    %c0_12 = arith.constant 0 : index
    %c0_13 = arith.constant 0 : index
    %23 = vector.load %arg4[%c0_12, %c0_13] : memref<8x128xf32, #tpu.memory_space<vmem>>, vector<8x128xf32>
    tpu.vector_store %arg4[%c0_12, %c0_13], %22 {strides = array<i32>} : memref<8x128xf32, #tpu.memory_space<vmem>>, vector<8x128xf32>,
    return
  }
  func.func @transform_0(%arg0: i32) -> (i32, i32) {
    %c0_i32 = arith.constant 0 : i32
    %c0_i32_0 = arith.constant 0 : i32
    return %arg0, %c0_i32 : i32, i32
  }
  func.func @transform_1(%arg0: i32) -> (i32, i32) {
    %c0_i32 = arith.constant 0 : i32
    %c0_i32_0 = arith.constant 0 : i32
    return %arg0, %c0_i32 : i32, i32
  }
  func.func @transform_2(%arg0: i32) -> (i32, i32) {
    %c0_i32 = arith.constant 0 : i32
    %c0_i32_0 = arith.constant 0 : i32
    %c0_i32_1 = arith.constant 0 : i32
    return %c0_i32, %c0_i32_0 : i32, i32
  }
  func.func @transform_3(%arg0: i32) -> (i32, i32) {
    %c0_i32 = arith.constant 0 : i32
    %c0_i32_0 = arith.constant 0 : i32
    return %arg0, %c0_i32 : i32, i32
  }
  func.func @transform_4(%arg0: i32) -> (i32, i32) {
    %c0_i32 = arith.constant 0 : i32
    %c0_i32_0 = arith.constant 0 : i32
    return %arg0, %c0_i32 : i32, i32
  }
}

</mosaic_0001>

<bundles_post_ra>
// kernel: tpu_custom_call.1
= control target key start
LH: loop header
LB: loop body
LE: loop exit
PB: predicated region body
PF: predicated region fallthrough
CT: control target
= control target key end

     0   :  { %10 = vsyncpa [#allocation3], 0  ;;  %s963_s0 = inlined_call_operand.hbm [shape: f32[16,128], index: 0, kind: input, shape index: {}]   ;;  %s964_s1 = inlined_call_operand.hbm [shape: f32[16,128], index: 1, kind: input, shape index: {}]   ;;  %s965_s2 = inlined_call_operand.vmem [shape: f32[1,128], index: 2, kind: input, shape index: {}]   ;;  %s966_s3 = inlined_call_operand.hbm [shape: f32[16,128], index: 3, kind: output, shape index: {0}]   ;;  %s967_s4 = inlined_call_operand.hbm [shape: f32[16,128], index: 4, kind: output, shape index: {1}]  }
   0x1   :  { %12 = vsyncpa [#allocation3 + $0x1], 0 }
   0x2   :  { %13 = vsyncpa [#allocation6], 0 }
   0x3   :  { %15 = vsyncpa [#allocation6 + $0x1], 0 }
   0x4   :  { %16 = vsyncpa [#allocation4], 0 }
   0x5   :  { %18 = vsyncpa [#allocation4 + $0x1], 0 }
   0x6   :  { %19 = vsyncpa [#allocation9], 0 }
   0x7   :  { %21 = vsyncpa [#allocation9 + $0x1], 0  ;;  %s714_s15 = smov 0   ;;  %s716_s16 = smov 0  }
   0x8   :  { %s718_s17 = smov 0   ;;  %s720_s18 = smov 0  }
   0x9 LB: > { %s735_s19 = sadd.s32 4294967295, %s683_s18   ;;  %s445_s20 = sadd.s32 4294967294, %s683_s18   ;;  %s683_s18 = sphi %s720_s18, %s986_s18   ;;  %s679_s17 = sphi %s718_s17, %s985_s17   ;;  %s675_s16 = sphi %s716_s16, %s984_s16   ;;  %s671_s15 = sphi %s714_s15, %s983_s15  }
   0xa   : > { %s739_s21 = sadd.s32 1, %s683_s18   ;;  %s34_s22 = sadd.s32 1, %s679_s17 }
   0xb   : > { %s31_s23 = ssub.s32 %s683_s18, %s739_s21  ;;  %p41_p0 = scmp.ne.s32.totalorder %s679_s17, %s675_s16 }
   0xc   : > { %p32_p1 = scmp.eq.s32.totalorder %s31_s23, 0  ;;  %p42_p2 = scmp.eq.s32.totalorder %s683_s18, 0 }
   0xd   : > { %p47_p3 = scmp.ne.s32.totalorder %s675_s16, %s671_s15  ;;  %p48_p4 = scmp.eq.s32.totalorder %s735_s19, 0 }
   0xe   : > { %s751_s24 = scalar_select %p32_p1, %s679_s17, %s34_s22  }
   0xf   : > { %p753_p5 = por %p42_p2, %p41_p0  ;;  %p757_p6 = por %p48_p4, %p47_p3 }
  0x10   : > { %p118_p7 = scmp.eq.s32.totalorder %s735_s19, 1  ;;  %p124_p8 = scmp.eq.s32.totalorder %s445_s20, 1 }
  0x11   : > { %s971_s26 = scalar_select %p757_p6, 1, 0 }
  0x12   : > { %p487_p10 = scmp.lt.s32.totalorder %s683_s18, 2  ;;  %p764_p11 = por %p118_p7, %p41_p0 }
  0x13   : > { %p768_p12 = por %p124_p8, %p47_p3  ;;  %s773_s29 = sand.u32 1, %s679_s17  }
  0x14   : > { %s972_s27 = scalar_select %p764_p11, 1, 0 }
  0x15   : > { %s973_s28 = scalar_select %p768_p12, 1, 0 }
  0x16   : > { %s449_s30 = sshll.u32 %s683_s18, 7  ;;  %s448_s5 = sshll.u32 %s773_s29, 3 }
  0x17   : > { %s782_s8 = scalar_lea.hbm %s963_s0, %s449_s30  ;;  %s177_s9 = scalar_lea.vmem [#allocation2], %s448_s5 }
  0x18   : > { %s184_s10 = sshll.u32 %s177_s9, 4  ;;  %p788_p13 = pnand %p487_p10, %p753_p5  ;;  %s792_s10 = int_to_ptr.vmem [resolvable:$true] %s184_s10 }
  0x19   : > { %s174_s12 = scalar_lea.sflag [#allocation3], %s773_s29  ;;  %s529_s13 = scalar_lea.hbm %s782_s8, 128 }
  0x1a   : > { %p530_p2 = scmp.ne.s32.totalorder %s782_s8, %s529_s13  ;;  %p531_p3 = pneg %p788_p13 }
  0x1b   : > { %s534_s22 = scalar_lea.hbm %s963_s0, 256  ;;  %p535_p5 = scmp.lt.s32.totalorder %s782_s8, %s963_s0 }
  0x1c   : > { %p532_p4 = pnand %p531_p3, %p530_p2  ;;  %p536_p8 = scmp.lt.s32.totalorder %s534_s22, %s529_s13 }
  0x1e   : > { %p533_p7 = pneg %p532_p4  ;;  %p537_p10 = por %p536_p8, %p535_p5 }
  0x20   : > { %p538_p9 = pnand %p537_p10, %p533_p7 }
  0x22   : > { %541 = shalt.err (!%p538_p9)
}
  0x23   : > { %s542_s6 = scalar_lea.vmem %s792_s10, 128  ;;  %s685_s7 = smov [#allocation2]  }
  0x24   : > { %p543_p0 = scmp.ne.s32.totalorder %s792_s10, %s542_s6  ;;  %s547_s9 = sshll.u32 %s685_s7, 4  ;;  %s548_s9 = int_to_ptr.vmem [resolvable:$false] %s547_s9 }
  0x25   : > { %s549_s14 = scalar_lea.vmem %s548_s9, 256  ;;  %p550_p1 = scmp.lt.s32.totalorder %s792_s10, %s548_s9 }
  0x26   : > { %p545_p2 = pnand %p543_p0, %p531_p3  ;;  %p551_p12 = scmp.lt.s32.totalorder %s549_s14, %s542_s6 }
  0x28   : > { %p546_p4 = pneg %p545_p2  ;;  %p552_p11 = por %p551_p12, %p550_p1 }
  0x2a   : > { %p553_p5 = pnand %p552_p11, %p546_p4 }
  0x2c   : > { %556 = shalt.err (!%p553_p5)
}
  0x2d   : > { %476 = dma.hbm_to_vmem [thread:$0]  (!%p788_p13), %s782_s8, 128, %s792_s10, %s174_s12  }
  0x2e   : > { %p975_p9 = scmp.lt.s32.totalorder %s683_s18, 3  ;;  %p976_p0 = scmp.ge.s32.totalorder %s683_s18, 1 }
  0x2f   : > { %s834_s23 = scalar_lea.hbm %s964_s1, %s449_s30  ;;  %s195_s25 = scalar_lea.vmem [#allocation5], %s448_s5 }
  0x30   : > { %p825_p7 = pnand %p976_p0, %p975_p9  ;;  %s202_s6 = sshll.u32 %s195_s25, 4  ;;  %s203_s6 = int_to_ptr.vmem [resolvable:$true] %s202_s6 }
  0x31   : > { %s192_s8 = scalar_lea.sflag [#allocation6], %s773_s29  ;;  %s557_s10 = scalar_lea.hbm %s834_s23, 128 }
  0x32   : > { %s977_s13 = scalar_select %p825_p7, 1, 0 }
  0x33   : > { %p558_p11 = scmp.ne.s32.totalorder %s834_s23, %s557_s10  ;;  %s562_s9 = scalar_lea.hbm %s964_s1, 256 }
  0x34   : > { %p563_p8 = scmp.lt.s32.totalorder %s834_s23, %s964_s1  ;;  %p564_p10 = scmp.lt.s32.totalorder %s562_s9, %s557_s10 }
  0x35   : > { %p560_p12 = pnand %p558_p11, %p531_p3 }
  0x36   : > { %p565_p2 = por %p564_p10, %p563_p8 }
  0x37   : > { %p561_p1 = pneg %p560_p12 }
  0x39   : > { %p566_p4 = pnand %p565_p2, %p561_p1 }
  0x3b   : > { %569 = shalt.err (!%p566_p4)
}
  0x3c   : > { %s570_s5 = scalar_lea.vmem %s203_s6, 128  ;;  %s686_s29 = smov [#allocation5]  }
  0x3d   : > { %p571_p5 = scmp.ne.s32.totalorder %s203_s6, %s570_s5  ;;  %s575_s20 = sshll.u32 %s686_s29, 4  ;;  %s576_s20 = int_to_ptr.vmem [resolvable:$false] %s575_s20 }
  0x3e   : > { %s577_s22 = scalar_lea.vmem %s576_s20, 256  ;;  %p578_p11 = scmp.lt.s32.totalorder %s203_s6, %s576_s20 }
  0x3f   : > { %p573_p9 = pnand %p571_p5, %p531_p3  ;;  %p579_p12 = scmp.lt.s32.totalorder %s577_s22, %s570_s5 }
  0x41   : > { %p574_p0 = pneg %p573_p9  ;;  %p580_p6 = por %p579_p12, %p578_p11 }
  0x43   : > { %p581_p7 = pnand %p580_p6, %p574_p0 }
  0x45   : > { %584 = shalt.err (!%p581_p7)
}
  0x46   : > { %479 = dma.hbm_to_vmem [thread:$0]  (!%p788_p13), %s834_s23, 128, %s203_s6, %s192_s8  }
  0x47   : > { %p978_p1 = scmp.ne.s32.totalorder %s977_s13, 0 }
  0x48   : > { %s860_s25 = sand.u32 (!%p978_p1), 1, %s675_s16   ;;  %p979_p6 = scmp.ne.s32.totalorder (!%p978_p1), %s971_s26, 0 }
  0x49   : > { %211 = sbr.rel (%p978_p1) target bundleno = 191 (0xbf), region = 32  ;;  %s863_s10 = sshll.u32 (!%p978_p1), %s860_s25, 3 }
  0x4a   : > { %s214_s12 = scalar_lea.sflag (!%p978_p1), [#allocation3], %s860_s25  ;;  %s217_s7 = scalar_lea.vmem (!%p978_p1), [#allocation2], %s863_s10 }
  0x4e   : > { %654 = dma.done.wait (%p979_p6), %s214_s12, 128  }
  0x4f   : > { %656 = vsyncadd (%p979_p6), %s214_s12, 4294967168  ;;  %s223_s11 = scalar_lea.sflag [#allocation6], %s860_s25  ;;  %s226_s13 = scalar_lea.vmem [#allocation5], %s863_s10 }
  0x50   : > { %658 = dma.done.wait (%p979_p6), %s223_s11, 128  }
  0x51   : > { %660 = vsyncadd (%p979_p6), %s223_s11, 4294967168  ;;  %v261_v0 = vld [vmem:[%s226_s13] sm:$0xff]  ;;  %v457_v7 = vld [vmem:[%s965_s2] ss:$0 sm:$0xff]  ;;  %s260_s26 = scalar_lea.vmem [#allocation8], %s863_s10  ;;  %s461_s9 = sshll.u32 %s735_s19, 7 }
  0x52   : > { %v262_v1 = vmax.f32 %v261_v0, 1.1920929e-07  ;;  %s320_s8 = sshll.u32 %s260_s26, 4  ;;  %s253_s30 = scalar_lea.vmem [#allocation7], %s863_s10  ;;  %v285_v14 = vld [vmem:[%s217_s7] sm:$0xff]  ;;  %s885_s8 = int_to_ptr.vmem [resolvable:$true] %s320_s8 }
  0x53   : > { %s307_s14 = sshll.u32 %s253_s30, 4  ;;  %s892_s20 = scalar_lea.hbm %s967_s4, %s461_s9  ;;  %s894_s14 = int_to_ptr.vmem [resolvable:$true] %s307_s14 }
  0x54   : > { %v263_v2 = vmin.f32 %v262_v1, 0.9999999  ;;  %s899_s12 = scalar_lea.hbm %s966_s3, %s461_s9  ;;  %s294_s11 = scalar_lea.sflag [#allocation9], %s860_s25 }
  0x55   : > { %s585_s13 = scalar_lea.vmem %s885_s8, 128  ;;  %p980_p3 = scmp.ne.s32.totalorder %s972_s27, 0 }
  0x56   : > { %v265_v3 = vsub.f32 1.0, %v263_v2  ;;  %p586_p13 = scmp.ne.s32.totalorder %s885_s8, %s585_s13  ;;  %s687_s7 = smov [#allocation8]  }
  0x57   : > { %s589_s23 = sshll.u32 %s687_s7, 4  ;;  %s590_s23 = int_to_ptr.vmem [resolvable:$false] %s589_s23 }
  0x58   : > { %521 = vrcp.f32 %v265_v3  ;;  %p587_p7 = pnand %p586_p13, %p980_p3  ;;  %s591_s6 = scalar_lea.vmem %s590_s23, 256 }
  0x59   : > { %p592_p10 = scmp.lt.s32.totalorder %s885_s8, %s590_s23  ;;  %p593_p2 = scmp.lt.s32.totalorder %s591_s6, %s585_s13 }
  0x5a   : > { %p588_p8 = pneg %p587_p7 }
  0x5b   : > { %p594_p4 = por %p593_p2, %p592_p10 }
  0x5d   : > { %p595_p5 = pnand %p594_p4, %p588_p8 }
  0x65   : > { %v522_v4 = vpop.eup %521 }
  0x66   : > { %v267_v5 = vmul.f32 %v522_v4, %v263_v2 }
  0x68   : > { %523 = vlog2.f32 %v267_v5 }
  0x75   : > { %v524_v6 = vpop.eup %523 }
  0x76   : > { %v269_v8 = vmul.f32 0.6931472, %v524_v6 }
  0x78   : > { %v276_v9 = vadd.f32 %v457_v7, %v269_v8 }
  0x7a   : > { %v458_v10 = vmul.f32 -10.0, %v276_v9 }
  0x7c   : > { %v279_v11 = vmul.f32 1.442695, %v458_v10 }
  0x7e   : > { %525 = vpow2.f32 %v279_v11 }
  0x8b   : > { %v526_v12 = vpop.eup %525 }
  0x8c   : > { %v281_v13 = vadd.f32 1.0, %v526_v12 }
  0x8e   : > { %527 = vrcp.f32 %v281_v13 }
  0x9b   : > { %v528_v15 = vpop.eup %527 }
  0x9c   : > { %284 = vst [vmem:[%s260_s26] sm:$0xff] %v528_v15  ;;  %v286_v16 = vmul.f32 %v528_v15, %v285_v14 }
  0x9d   : > { %598 = shalt.err (!%p595_p5)
}
  0x9e   : > { %s599_s26 = scalar_lea.hbm %s892_s20, 128  ;;  %s603_s29 = scalar_lea.hbm %s967_s4, 256 }
  0x9f   : > { %p600_p9 = scmp.ne.s32.totalorder %s892_s20, %s599_s26  ;;  %p604_p12 = scmp.lt.s32.totalorder %s892_s20, %s967_s4 }
  0xa0   : > { %p605_p1 = scmp.lt.s32.totalorder %s603_s29, %s599_s26 }
  0xa1   : > { %p601_p0 = pnand %p600_p9, %p980_p3 }
  0xa2   : > { %p606_p6 = por %p605_p1, %p604_p12 }
  0xa3   : > { %p602_p11 = pneg %p601_p0 }
  0xa5   : > { %p607_p13 = pnand %p606_p6, %p602_p11 }
  0xa7   : > { %610 = shalt.err (!%p607_p13)
}
  0xa8   : > { %470 = dma.vmem_to_hbm [thread:$0]  (%p980_p3), %s885_s8, 128, %s892_s20, %s294_s11   ;;  %287 = vst [vmem:[%s253_s30] sm:$0xff] %v286_v16 }
  0xa9   : > { %s289_s13 = scalar_lea.sflag [#allocation4], %s860_s25  ;;  %s611_s7 = scalar_lea.vmem %s894_s14, 128 }
  0xaa   : > { %p612_p7 = scmp.ne.s32.totalorder %s894_s14, %s611_s7  ;;  %s688_s23 = smov [#allocation7]  }
  0xab   : > { %s615_s6 = sshll.u32 %s688_s23, 4  ;;  %s616_s6 = int_to_ptr.vmem [resolvable:$false] %s615_s6 }
  0xac   : > { %p613_p8 = pnand %p612_p7, %p980_p3  ;;  %s617_s26 = scalar_lea.vmem %s616_s6, 256 }
  0xad   : > { %p618_p2 = scmp.lt.s32.totalorder %s894_s14, %s616_s6  ;;  %p619_p4 = scmp.lt.s32.totalorder %s617_s26, %s611_s7 }
  0xae   : > { %p614_p10 = pneg %p613_p8 }
  0xaf   : > { %p620_p5 = por %p619_p4, %p618_p2 }
  0xb1   : > { %p621_p9 = pnand %p620_p5, %p614_p10 }
  0xb3   : > { %624 = shalt.err (!%p621_p9)
}
  0xb4   : > { %s625_s10 = scalar_lea.hbm %s899_s12, 128  ;;  %s629_s30 = scalar_lea.hbm %s966_s3, 256 }
  0xb5   : > { %p626_p0 = scmp.ne.s32.totalorder %s899_s12, %s625_s10  ;;  %p630_p1 = scmp.lt.s32.totalorder %s899_s12, %s966_s3 }
  0xb6   : > { %p631_p6 = scmp.lt.s32.totalorder %s629_s30, %s625_s10 }
  0xb7   : > { %p627_p11 = pnand %p626_p0, %p980_p3 }
  0xb8   : > { %p632_p13 = por %p631_p6, %p630_p1 }
  0xb9   : > { %p628_p12 = pneg %p627_p11 }
  0xbb   : > { %p633_p7 = pnand %p632_p13, %p628_p12 }
  0xbd   : > { %636 = shalt.err (!%p633_p7)
}
  0xbe   : > { %469 = dma.vmem_to_hbm [thread:$0]  (%p980_p3), %s894_s14, 128, %s899_s12, %s289_s13  }
  0xbf PF: > { %s332_s9 = sand.u32 1, %s671_s15   ;;  %p981_p8 = scmp.ne.s32.totalorder %s973_s28, 0 }
  0xc0   : > { %p982_p10 = scmp.ge.s32.totalorder %s683_s18, 2  ;;  %s333_s5 = scalar_lea.sflag [#allocation4], %s332_s9 }
  0xc2   : > { %p481_p2 = pnand %p982_p10, %p981_p8 }
  0xc4   : > { %p482_p4 = pneg %p481_p2 }
  0xc6   : > { %662 = dma.done.wait (%p482_p4), %s333_s5, 128  }
  0xc7   : > { %664 = vsyncadd (%p482_p4), %s333_s5, 4294967168  ;;  %s342_s29 = scalar_lea.sflag [#allocation9], %s332_s9 }
  0xc8   : > { %666 = dma.done.wait (%p482_p4), %s342_s29, 128  }
  0xc9   : > { %668 = vsyncadd (%p482_p4), %s342_s29, 4294967168  ;;  %p24_p3 = scmp.ge.s32.totalorder %s739_s21, 4   ;;  %s983_s15 = smov %s675_s16 }
  0xca   : > { %s984_s16 = smov %s679_s17  ;;  %s985_s17 = smov %s751_s24 }
  0xcb   : > { %s986_s18 = smov %s739_s21  ;;  %26 = sbr.rel (!%p24_p3) target bundleno = 9 (0x9), region = 107 }
  0xd0   :  { %347 = vsyncpa [#allocation3], 1 }
  0xd1   :  { %349 = vsyncpa [#allocation3 + $0x1], 1 }
  0xd2   :  { %350 = vsyncpa [#allocation6], 1 }
  0xd3   :  { %352 = vsyncpa [#allocation6 + $0x1], 1 }
  0xd4   :  { %353 = vsyncpa [#allocation4], 1 }
  0xd5   :  { %355 = vsyncpa [#allocation4 + $0x1], 1 }
  0xd6   :  { %356 = vsyncpa [#allocation9], 1 }
  0xd7   :  { %358 = vsyncpa [#allocation9 + $0x1], 1 }

</bundles_post_ra>
